<compile_context>
chip_gen: v7x
topology: tpu7x:2x2x1
jax: 0.10.0
libtpu: 0.0.40
codegen_flags: <defaults>
</compile_context>

<pallas_src>
import jax
import jax.numpy as jnp
from jax.experimental import pallas as pl
from jax.experimental.pallas import tpu as pltpu

_LANE = 128


# ----------------------------- Pallas kernel --------------------------------
def _propagate_kernel(x_ref, h_ref, o_ref):
    # (B, K) @ (K, tn) -> (B, tn): bf16 operands, f32 accumulation on the MXU.
    o_ref[...] = jnp.dot(x_ref[...], h_ref[...],
                         preferred_element_type=jnp.float32)


def _propagate(x_bf16, h_cat, tn, vmem_limit_bytes):
    """x_bf16: (B, K) bf16, h_cat: (K, W_pad) bf16 with W_pad % tn == 0."""
    B, K = x_bf16.shape
    _, w_pad = h_cat.shape
    grid = (w_pad // tn,)
    return pl.pallas_call(
        _propagate_kernel,
        out_shape=jax.ShapeDtypeStruct((B, w_pad), jnp.float32),
        grid_spec=pltpu.PrefetchScalarGridSpec(
            num_scalar_prefetch=0,
            grid=grid,
            in_specs=[
                pl.BlockSpec((B, K), lambda j: (0, 0)),    # image (resident)
                pl.BlockSpec((K, tn), lambda j: (0, j)),   # H stripe (streamed)
            ],
            out_specs=pl.BlockSpec((B, tn), lambda j: (0, j)),
        ),
        compiler_params=pltpu.CompilerParams(
            dimension_semantics=("parallel",),
            vmem_limit_bytes=vmem_limit_bytes),
    )(x_bf16, h_cat)


# ------------------- deterministic parameter construction -------------------
def build_propagation_matrix(dim_in, dim_out, pixel_size, wavelength,
                             layer_distance, samples_per_pixel):
    """1-D Rayleigh-Sommerfeld transfer matrix H of shape (Nin, Nout), f32."""
    n_in = dim_in * samples_per_pixel
    n_out = dim_out * samples_per_pixel
    ds = pixel_size / samples_per_pixel
    xi = (jnp.arange(n_in, dtype=jnp.float32) - (n_in - 1) / 2.0) * ds
    xo = (jnp.arange(n_out, dtype=jnp.float32) - (n_out - 1) / 2.0) * ds
    dx = xo[None, :] - xi[:, None]                        # (Nin, Nout)
    z = jnp.float32(layer_distance)
    r = jnp.sqrt(dx * dx + z * z)
    k = 2.0 * jnp.pi / wavelength
    # w = (z / r^2) * (1/(2*pi*r) + 1/(i*lambda)) * exp(i*k*r) * ds
    amp = (z / (r * r)) * ds
    a = amp / (2.0 * jnp.pi * r)                          # real prefactor
    b = -amp / wavelength                                 # imag prefactor
    c, s = jnp.cos(k * r), jnp.sin(k * r)
    h_real = a * c - b * s
    h_imag = a * s + b * c
    return h_real.astype(jnp.float32), h_imag.astype(jnp.float32)


def _choose_tile(width, k):
    """Tile width: multiple of 128, <=512, bounded by a ~16 MiB H-stripe budget."""
    w128 = -(-width // _LANE) * _LANE
    h_budget = 16 << 20                 # bytes for 2 double-buffered bf16 stripes
    max_tn = max(_LANE, (h_budget // (4 * max(k, 1))) // _LANE * _LANE)
    return int(min(512, w128, max_tn))


class InitialLayerPallas:
    """Mirror of diffml.layers.InitialLayer (forward only)."""

    def __init__(self, dim_in, dim_out, pixel_size, wavelength,
                 layer_distance, samples_per_pixel, propagation_method):
        self.dim_in = dim_in
        self.dim_out = dim_out
        self.samples_per_pixel = samples_per_pixel
        self.propagation_method = propagation_method
        self.n_out = dim_out * samples_per_pixel

        # register_buffer('initial_field', torch.ones(dim_in * spp))
        self.initial_field = jnp.ones(dim_in * samples_per_pixel, jnp.float32)

        h_real, h_imag = build_propagation_matrix(
            dim_in, dim_out, pixel_size, wavelength,
            layer_distance, samples_per_pixel)

        # Fold the spp upsampling and the initial field into H (exact algebra):
        #   out[b,o] = sum_i x[b,i] * sum_s field[i*spp+s] * H[i*spp+s, o]
        spp = samples_per_pixel
        fld = self.initial_field.reshape(dim_in, spp, 1)
        hr_fold = (fld * h_real.reshape(dim_in, spp, self.n_out)).sum(axis=1)
        hi_fold = (fld * h_imag.reshape(dim_in, spp, self.n_out)).sum(axis=1)

        # One wide matrix: [H_real | H_imag], zero-padded to a tile multiple.
        h_cat = jnp.concatenate([hr_fold, hi_fold], axis=1)   # (dim_in, 2*Nout)
        width = 2 * self.n_out
        self.tn = _choose_tile(width, dim_in)
        w_pad = -(-width // self.tn) * self.tn
        if w_pad > width:
            h_cat = jnp.pad(h_cat, ((0, 0), (0, w_pad - width)))
        self.h_cat = h_cat.astype(jnp.bfloat16)               # (dim_in, W_pad)

    def __call__(self, input_image):
        x = input_image.astype(jnp.bfloat16)                  # (B, dim_in)
        B, K = x.shape
        # Explicit scoped-VMEM budget; capped at 48 MiB (safe on v7x's 64 MiB).
        est = (2 * K * self.tn * 2          # 2 H stripe buffers (bf16)
               + 2 * B * self.tn * 4        # 2 output tile buffers (f32)
               + 2 * B * K * 2)             # resident image (bf16)
        vmem_limit = int(min(48 << 20, max(32 << 20, 4 * est)))
        out = _propagate(x, self.h_cat, self.tn, vmem_limit)  # (B, W_pad) f32
        out_r = out[:, :self.n_out]
        out_i = out[:, self.n_out:2 * self.n_out]
        return jax.lax.complex(out_r, out_i)                  # (B, Nout) c64

    def get_modulation_profile(self, to_cpu=True):
        return None


# --------------------------------- main --------------------------------------
if __name__ == "__main__":
    dim_in = 32
    dim_out = 128
    samples_per_pixel = 4
    pixel_size = 8e-6
    wavelength = 532e-9
    layer_distance = 0.01
    batch = 2

    layer = InitialLayerPallas(dim_in, dim_out, pixel_size, wavelength,
                               layer_distance, samples_per_pixel,
                               propagation_method="rayleigh_sommerfeld")

    key = jax.random.PRNGKey(0)
    input_image = jax.random.uniform(key, (batch, dim_in), dtype=jnp.float32)

    out = jax.block_until_ready(layer(input_image))

    # Pure-JAX f32 reference of the ORIGINAL (unfolded) module semantics.
    h_real, h_imag = build_propagation_matrix(
        dim_in, dim_out, pixel_size, wavelength,
        layer_distance, samples_per_pixel)
    x_up = jnp.repeat(input_image, samples_per_pixel, axis=-1)
    mod = x_up * layer.initial_field[None, :]
    ref = (mod @ h_real) + 1j * (mod @ h_imag)

    assert out.shape == (batch, dim_out * samples_per_pixel)
    # bf16 H / activations with f32 accumulation: check normalized max error.
    scale = jnp.max(jnp.abs(ref)) + 1e-12
    err_r = jnp.max(jnp.abs(out.real - ref.real)) / scale
    err_i = jnp.max(jnp.abs(out.imag - ref.imag)) / scale
    assert float(err_r) < 2e-2, float(err_r)
    assert float(err_i) < 2e-2, float(err_i)

    print("KERNEL_OK")
</pallas_src>

<mosaic_0001>
module attributes {stable_mosaic.version = 11 : i64} {
  func.func @_propagate_kernel(%arg0: i32, %arg1: memref<2x32xbf16, #tpu.memory_space<vmem>>, %arg2: memref<32x512xbf16, #tpu.memory_space<vmem>>, %arg3: memref<2x512xf32, #tpu.memory_space<vmem>>) attributes {dimension_semantics = [#tpu.dimension_semantics<parallel>], iteration_bounds = array<i64: 2>, scalar_prefetch = 0 : i64, scratch_operands = 0 : i64, tpu.core_type = #tpu.core_type<tc>, window_params = [{pipeline_mode = #tpu.pipeline_mode<synchronous>, transform_indices = @transform_0, window_bounds = array<i64: 2, 32>}, {transform_indices = @transform_1, window_bounds = array<i64: 32, 512>}, {transform_indices = @transform_2, window_bounds = array<i64: 2, 512>}]} {
    %c0 = arith.constant 0 : index
    %c0_0 = arith.constant 0 : index
    %0 = vector.load %arg1[%c0, %c0_0] : memref<2x32xbf16, #tpu.memory_space<vmem>>, vector<2x32xbf16>
    %c0_1 = arith.constant 0 : index
    %c0_2 = arith.constant 0 : index
    %1 = vector.load %arg2[%c0_1, %c0_2] : memref<32x512xbf16, #tpu.memory_space<vmem>>, vector<32x512xbf16>
    %cst = arith.constant dense<0.000000e+00> : vector<2x512xf32>
    %2 = tpu.matmul %0, %1, %cst {dimension_numbers = #tpu.dot_dimension_numbers<[1], [0], [0], [1], [0, 0, 1, 1], [], []>} : vector<2x32xbf16>, vector<32x512xbf16>, vector<2x512xf32> -> vector<2x512xf32>
    %c0_3 = arith.constant 0 : index
    %c0_4 = arith.constant 0 : index
    %3 = vector.load %arg3[%c0_3, %c0_4] : memref<2x512xf32, #tpu.memory_space<vmem>>, vector<2x512xf32>
    tpu.vector_store %arg3[%c0_3, %c0_4], %2 {strides = array<i32>} : memref<2x512xf32, #tpu.memory_space<vmem>>, vector<2x512xf32>,
    return
  }
  func.func @transform_0(%arg0: i32) -> (i32, i32) {
    %c0_i32 = arith.constant 0 : i32
    %c0_i32_0 = arith.constant 0 : i32
    %c0_i32_1 = arith.constant 0 : i32
    return %c0_i32, %c0_i32_0 : i32, i32
  }
  func.func @transform_1(%arg0: i32) -> (i32, i32) {
    %c0_i32 = arith.constant 0 : i32
    %c0_i32_0 = arith.constant 0 : i32
    return %c0_i32, %arg0 : i32, i32
  }
  func.func @transform_2(%arg0: i32) -> (i32, i32) {
    %c0_i32 = arith.constant 0 : i32
    %c0_i32_0 = arith.constant 0 : i32
    return %c0_i32, %arg0 : i32, i32
  }
}

</mosaic_0001>

<bundles_post_ra>
// kernel: tpu_custom_call.1
= control target key start
LH: loop header
LB: loop body
LE: loop exit
PB: predicated region body
PF: predicated region fallthrough
CT: control target
= control target key end

     0   :  { %7 = vsyncpa [#allocation3], 0  ;;  %s885_s0 = inlined_call_operand.hbm [shape: bf16[2,32], index: 0, kind: input, shape index: {}]   ;;  %s886_s1 = inlined_call_operand.hbm [shape: bf16[32,1024], index: 1, kind: input, shape index: {}]   ;;  %s887_s2 = inlined_call_operand.hbm [shape: f32[2,1024], index: 2, kind: output, shape index: {}]  }
   0x1   :  { %8 = vsyncpa [#allocation6], 0 }
   0x2   :  { %10 = vsyncpa [#allocation6 + $0x1], 0 }
   0x3   :  { %11 = vsyncpa [#allocation4], 0 }
   0x4   :  { %13 = vsyncpa [#allocation4 + $0x1], 0  ;;  %s688_s9 = smov 0   ;;  %s690_s10 = smov 0  }
   0x5   :  { %s692_s11 = smov 0   ;;  %s694_s12 = smov 0  }
   0x6 LB: > { %s709_s13 = sadd.s32 4294967295, %s663_s12   ;;  %s433_s14 = sadd.s32 4294967294, %s663_s12   ;;  %s663_s12 = sphi %s694_s12, %s912_s12   ;;  %s659_s11 = sphi %s692_s11, %s911_s11   ;;  %s655_s10 = sphi %s690_s10, %s910_s10   ;;  %s651_s9 = sphi %s688_s9, %s909_s9  }
   0x7   : > { %s713_s15 = sadd.s32 1, %s663_s12   ;;  %s47_s16 = sadd.s32 1, %s659_s11 }
   0x8   : > { %s44_s17 = ssub.s32 %s663_s12, %s713_s15  ;;  %p54_p0 = scmp.ne.s32.totalorder %s659_s11, %s655_s10 }
   0x9   : > { %p45_p1 = scmp.eq.s32.totalorder %s44_s17, 0  ;;  %p55_p2 = scmp.eq.s32.totalorder %s663_s12, 0 }
   0xa   : > { %p60_p3 = scmp.ne.s32.totalorder %s655_s10, %s651_s9  ;;  %p888_p4 = scmp.eq.s32.totalorder %s709_s13, 0 }
   0xb   : > { %s725_s18 = scalar_select %p45_p1, %s659_s11, %s47_s16  }
   0xc   : > { %p727_p5 = por %p55_p2, %p54_p0  ;;  %p733_p6 = por %p888_p4, %p60_p3 }
   0xd   : > { %p84_p7 = scmp.eq.s32.totalorder %s709_s13, 1  ;;  %p90_p8 = scmp.eq.s32.totalorder %s433_s14, 1 }
   0xe   : > { %s894_s20 = scalar_select %p733_p6, 1, 0 }
   0xf   : > { %p434_p9 = scmp.ge.s32.totalorder %s663_s12, 1  ;;  %p97_p10 = scmp.lt.s32.totalorder %s663_s12, 3 }
  0x10   : > { %p740_p11 = por %p84_p7, %p54_p0  ;;  %p744_p12 = por %p90_p8, %p60_p3 }
  0x11   : > { %p748_p13 = pnand %p434_p9, %p97_p10  ;;  %s665_s24 = smov [#allocation2]  }
  0x12   : > { %s895_s21 = scalar_select %p740_p11, 1, 0 }
  0x13   : > { %s896_s22 = scalar_select %p744_p12, 1, 0 }
  0x14   : > { %s897_s23 = scalar_select %p748_p13, 1, 0 }
  0x15   : > { %p469_p2 = pneg %p748_p13  ;;  %s110_s25 = sshll.u32 %s665_s24, 4  ;;  %s111_s25 = int_to_ptr.vmem [resolvable:$true] %s110_s25 }
  0x16   : > { %p482_p4 = scmp.lt.s32.totalorder %s663_s12, 2  ;;  %p898_p0 = scmp.eq.s32.totalorder %s709_s13, 0 }
  0x17   : > { %s121_s27 = sand.u32 1, %s659_s11   ;;  %s535_s4 = scalar_lea.hbm %s885_s0, 16 }
  0x18   : > { %p758_p7 = pnand %p469_p2, %p898_p0  ;;  %p765_p3 = pnand %p482_p4, %p727_p5 }
  0x19   : > { %s437_s29 = sshll.u32 %s121_s27, 6  ;;  %p536_p8 = scmp.ne.s32.totalorder %s885_s0, %s535_s4 }
  0x1a   : > { %s900_s28 = scalar_select %p765_p3, 1, 0 }
  0x1b   : > { %p537_p9 = pneg %p758_p7  ;;  %p542_p4 = scmp.lt.u32.totalorder %s535_s4, %s885_s0 }
  0x1d   : > { %p538_p10 = pnand %p537_p9, %p536_p8 }
  0x1f   : > { %p539_p2 = pneg %p538_p10 }
  0x21   : > { %p544_p5 = pnand %p542_p4, %p539_p2 }
  0x23   : > { %547 = shalt.err (!%p544_p5)
}
  0x24   : > { %s548_s14 = scalar_lea.vmem %s111_s25, 16  ;;  %s555_s16 = scalar_lea.vmem %s111_s25, 32 }
  0x25   : > { %p549_p0 = scmp.ne.s32.totalorder %s111_s25, %s548_s14  ;;  %p556_p11 = scmp.lt.s32.totalorder %s111_s25, %s111_s25 }
  0x26   : > { %p557_p6 = scmp.lt.s32.totalorder %s555_s16, %s548_s14 }
  0x27   : > { %p551_p1 = pnand %p549_p0, %p537_p9 }
  0x28   : > { %p558_p13 = por %p557_p6, %p556_p11 }
  0x29   : > { %p552_p12 = pneg %p551_p1 }
  0x2b   : > { %p559_p3 = pnand %p558_p13, %p552_p12 }
  0x2d   : > { %562 = shalt.err (!%p559_p3)
}
  0x2e   : > { %472 = dma.hbm_to_vmem [thread:$0]  (!%p758_p7), %s885_s0, 16, %s111_s25, [#allocation3]  }
  0x2f   : > { %s459_s24 = sshll.u32 %s663_s12, 8  ;;  %s125_s30 = scalar_lea.vmem [#allocation5], %s437_s29 }
  0x30   : > { %s132_s3 = sshll.u32 %s125_s30, 4  ;;  %s789_s6 = scalar_lea.hbm %s886_s1, %s459_s24  ;;  %s791_s3 = int_to_ptr.vmem [resolvable:$true] %s132_s3 }
  0x31   : > { %s793_s26 = scalar_lea.sflag [#allocation6], %s121_s27  ;;  %s563_s7 = scalar_lea.hbm %s789_s6, 1024 }
  0x32   : > { %p564_p6 = scmp.ne.s32.totalorder %s789_s6, %s563_s7  ;;  %p901_p11 = scmp.ne.s32.totalorder %s900_s28, 0 }
  0x33   : > { %s568_s8 = scalar_lea.hbm %s886_s1, 2048  ;;  %p569_p7 = scmp.lt.u32.totalorder %s789_s6, %s886_s1 }
  0x34   : > { %p565_p12 = pneg %p901_p11  ;;  %p570_p3 = scmp.lt.u32.totalorder %s568_s8, %s563_s7 }
  0x35   : > { %p572_p9 = scmp.lt.u32.totalorder %s563_s7, %s789_s6 }
  0x36   : > { %p566_p13 = pnand %p565_p12, %p564_p6  ;;  %p571_p8 = por %p570_p3, %p569_p7 }
  0x38   : > { %p567_p1 = pneg %p566_p13  ;;  %p573_p10 = por %p572_p9, %p571_p8 }
  0x3a   : > { %p574_p2 = pnand %p573_p10, %p567_p1 }
  0x3c   : > { %577 = shalt.err (!%p574_p2)
}
  0x3d   : > { %s578_s27 = scalar_lea.vmem %s791_s3, 1024  ;;  %s666_s17 = smov [#allocation5]  }
  0x3e   : > { %p579_p4 = scmp.ne.s32.totalorder %s791_s3, %s578_s27  ;;  %s583_s19 = sshll.u32 %s666_s17, 4  ;;  %s584_s19 = int_to_ptr.vmem [resolvable:$false] %s583_s19 }
  0x3f   : > { %s585_s24 = scalar_lea.vmem %s584_s19, 2048  ;;  %p586_p6 = scmp.lt.s32.totalorder %s791_s3, %s584_s19 }
  0x40   : > { %p581_p5 = pnand %p579_p4, %p565_p12  ;;  %p587_p13 = scmp.lt.s32.totalorder %s585_s24, %s578_s27 }
  0x42   : > { %p582_p0 = pneg %p581_p5  ;;  %p588_p7 = por %p587_p13, %p586_p6 }
  0x44   : > { %p589_p3 = pnand %p588_p7, %p582_p0 }
  0x46   : > { %592 = shalt.err (!%p589_p3)
}
  0x47   : > { %s667_s30 = smov 512   ;;  %s668_s4 = smov 256  }
  0x48   : > { %s669_s5 = smov 16   ;;  %p902_p12 = scmp.ne.s32.totalorder %s897_s23, 0 }
  0x49   : > { %476 = dma.hbm_to_vmem [thread:$0]  (!%p901_p11), %s789_s6, 1024, %s791_s3, %s793_s26, %s667_s30, %s668_s4, %s669_s5  }
  0x4a   : > { %144 = sbr.rel (%p902_p12) target bundleno = 329 (0x149), region = 28  ;;  %p903_p1 = scmp.eq.s32.totalorder (!%p902_p12), %s709_s13, 0 }
  0x51   : > { %638 = dma.done.wait (%p903_p1), [#allocation3], 16   ;;  %p904_p8 = pmov %p903_p1 }
  0x52   : > { %s828_s7 = sand.u32 1, %s655_s10   ;;  %p905_p9 = scmp.ne.s32.totalorder %s894_s20, 0 }
  0x53   : > { %640 = vsyncadd (%p904_p8), [#allocation3], 4294967280  ;;  %s442_s25 = sshll.u32 %s828_s7, 6  ;;  %s151_s29 = scalar_lea.sflag [#allocation6], %s828_s7 }
  0x54   : > { %s154_s8 = scalar_lea.vmem [#allocation5], %s442_s25 }
  0x55   : > { %642 = dma.done.wait (%p905_p9), %s151_s29, 1024  }
  0x56   : > { %644 = vsyncadd (%p905_p9), %s151_s29, 4294966272  ;;  %v670_v0 = vmov 0   ;;  %v523_v1 = vld [vmem:[%s154_s8 + $0x4] ss:$16 sps:$4 sm:$0xff]   ;;  %v525_v2 = vld [vmem:[%s154_s8 + $0xc] ss:$16 sps:$4 sm:$0xff]   ;;  %v322_v12 = vlaneseq }
  0x57   : > { %263 = vmatprep.mubr.bf16.mxu0 %v670_v0  ;;  %304 = vmatprep.mubr.bf16.mxu1 %v670_v0  ;;  %v527_v3 = vld [vmem:[%s154_s8] ss:$16 sps:$4 sm:$0xff]   ;;  %v528_v4 = vld [vmem:[%s154_s8 + $0x8] ss:$16 sps:$4 sm:$0xff]   ;;  %v529_v5 = vld [vmem:[%s154_s8 + $0x24] ss:$16 sps:$4 sm:$0xff]  }
  0x58   : > { %231 = vmatprep.subr.bf16.mxu0 %v523_v1  ;;  %272 = vmatprep.subr.bf16.mxu1 %v525_v2  ;;  %v531_v6 = vld [vmem:[%s154_s8 + $0x2c] ss:$16 sps:$4 sm:$0xff]   ;;  %v533_v7 = vld [vmem:[%s154_s8 + $0x20] ss:$16 sps:$4 sm:$0xff]   ;;  %v534_v8 = vld [vmem:[%s154_s8 + $0x28] ss:$16 sps:$4 sm:$0xff]  }
  0x59   : > { %232 = vmatpush1.bf16.msra.mxu0 %v527_v3  ;;  %273 = vmatpush1.bf16.msra.mxu1 %v528_v4  ;;  %v178_v9 = vld [vmem:[#allocation2] sm:$0x1]  ;;  %vm227_vm0 = vcmask 261120   ;;  %v671_v10 = vmov 1983009808   ;;  %v323_v14 = vshrl.u32 %v322_v12, 7 }
  0x5a   : > { %233 = vmatprep.subr.bf16.mxu0 %v529_v5  ;;  %274 = vmatprep.subr.bf16.mxu1 %v531_v6  ;;  %v320_v11 = vunpack.c.l.s4 %v671_v10  ;;  %s443_s20 = sshll.u32 %s828_s7, 3  ;;  %s460_s23 = sshll.u32 %s709_s13, 7 }
  0x5b   : > { %s174_s28 = scalar_lea.vmem [#allocation7], %s443_s20  ;;  %s841_s14 = scalar_lea.hbm %s887_s2, %s460_s23 }
  0x5c   : > { %v321_v13 = vunpack.c.0.s8 %v320_v11  ;;  %s351_s3 = sshll.u32 %s174_s28, 4  ;;  %s337_s16 = scalar_lea.sflag [#allocation4], %s828_s7  ;;  %s843_s3 = int_to_ptr.vmem [resolvable:$true] %s351_s3 }
  0x5d   : > { %234 = vmatpush1.bf16.msra.mxu0 %v533_v7  ;;  %275 = vmatpush1.bf16.msra.mxu1 %v534_v8  ;;  %s593_s27 = scalar_lea.vmem %s843_s3, 128  ;;  %p906_p10 = scmp.ne.s32.totalorder %s895_s21, 0 }
  0x5e   : > { %v324_v17 = vsub.s32 %v321_v13, %v323_v14  ;;  %p594_p11 = scmp.ne.s32.totalorder %s843_s3, %s593_s27  ;;  %s672_s13 = smov [#allocation7]  }
  0x5f   : > { %s597_s17 = sshll.u32 %s672_s13, 4  ;;  %s598_s17 = int_to_ptr.vmem [resolvable:$false] %s597_s17 }
  0x60   : > { %452 = vmatmul.mubr.msk.bf16.vlgmr.msra.gmra.mrb[0].mxu0 %vm227_vm0, %v178_v9  ;;  %453 = vmatmul.mubr.msk.bf16.vlgmr.msra.gmra.mrb[0].mxu1 %vm227_vm0, %v178_v9  ;;  %p595_p2 = pnand %p594_p11, %p906_p10  ;;  %s599_s19 = scalar_lea.vmem %s598_s17, 256 }
  0x61   : > { %p600_p5 = scmp.lt.s32.totalorder %s843_s3, %s598_s17  ;;  %p601_p0 = scmp.lt.s32.totalorder %s599_s19, %s593_s27 }
  0x62   : > { %p596_p4 = pneg %p595_p2 }
  0x63   : > { %p602_p6 = por %p601_p0, %p600_p5 }
  0x65   : > { %p603_p13 = pnand %p602_p6, %p596_p4 }
 0x133   : > { %v265_v15 = vpop.f32.mrb[0].mxu0  ;;  %v306_v16 = vpop.f32.mrb[0].mxu1 }
 0x134   : > { %v267_v18 = vpop.f32.mrb[1].mxu0  ;;  %v308_v19 = vpop.f32.mrb[1].mxu1 }
 0x135   : > { %v317_v20 = vcombine.low %v265_v15, %v267_v18  ;;  %v318_v21 = vcombine.low %v306_v16, %v308_v19  ;;  %v269_v22 = vpop.f32.mrb[2].mxu0  ;;  %v310_v23 = vpop.f32.mrb[2].mxu1 }
 0x136   : > { %v270_v24 = vpop.f32.mrb[3].mxu0  ;;  %v311_v25 = vpop.f32.mrb[3].mxu1 }
 0x137   : > { %v325_v26 = vrot.slane %v317_v20, %v324_v17  ;;  %v332_v27 = vrot.slane %v318_v21, %v324_v17 }
 0x139   : > { %v333_v28 = vcombine.low %v325_v26, %v332_v27 }
 0x13b   : > { %335 = vst [vmem:[%s174_s28] sm:$0xff] %v333_v28 }
 0x13c   : > { %606 = shalt.err (!%p603_p13)
}
 0x13d   : > { %s607_s24 = scalar_lea.hbm %s841_s14, 128  ;;  %s611_s5 = scalar_lea.hbm %s887_s2, 256 }
 0x13e   : > { %p608_p7 = scmp.ne.s32.totalorder %s841_s14, %s607_s24  ;;  %p612_p1 = scmp.lt.u32.totalorder %s841_s14, %s887_s2 }
 0x13f   : > { %p613_p8 = scmp.lt.u32.totalorder %s611_s5, %s607_s24  ;;  %p615_p11 = scmp.lt.u32.totalorder %s607_s24, %s841_s14 }
 0x140   : > { %p609_p3 = pnand %p608_p7, %p906_p10 }
 0x141   : > { %p614_p9 = por %p613_p8, %p612_p1 }
 0x142   : > { %p610_p12 = pneg %p609_p3 }
 0x143   : > { %p616_p2 = por %p615_p11, %p614_p9 }
 0x145   : > { %p617_p4 = pnand %p616_p2, %p610_p12 }
 0x147   : > { %620 = shalt.err (!%p617_p4)
}
 0x148   : > { %467 = dma.vmem_to_hbm [thread:$0]  (%p906_p10), %s843_s3, 128, %s841_s14, %s337_s16  }
 0x149 PF: > { %s363_s29 = sand.u32 1, %s651_s9   ;;  %p907_p5 = scmp.ne.s32.totalorder %s896_s22, 0 }
 0x14a   : > { %p908_p0 = scmp.ge.s32.totalorder %s663_s12, 2  ;;  %s364_s8 = scalar_lea.sflag [#allocation4], %s363_s29 }
 0x14c   : > { %p478_p6 = pnand %p908_p0, %p907_p5 }
 0x14e   : > { %646 = dma.done.wait (!%p478_p6), %s364_s8, 128  }
 0x14f   : > { %648 = vsyncadd (!%p478_p6), %s364_s8, 4294967168  ;;  %p16_p13 = scmp.ge.s32.totalorder %s713_s15, 4   ;;  %s909_s9 = smov %s655_s10 }
 0x150   : > { %s910_s10 = smov %s659_s11  ;;  %s911_s11 = smov %s725_s18 }
 0x151   : > { %s912_s12 = smov %s713_s15  ;;  %18 = sbr.rel (!%p16_p13) target bundleno = 6 (0x6), region = 78 }
 0x158   :  { %369 = vsyncpa [#allocation3], 1 }
 0x159   :  { %371 = vsyncpa [#allocation3 + $0x1], 1 }
 0x15a   :  { %372 = vsyncpa [#allocation6], 1 }
 0x15b   :  { %374 = vsyncpa [#allocation6 + $0x1], 1 }
 0x15c   :  { %375 = vsyncpa [#allocation4], 1 }
 0x15d   :  { %377 = vsyncpa [#allocation4 + $0x1], 1 }

</bundles_post_ra>
